<compile_context>
chip_gen: v5e
topology: v5e:2x2
jax: 0.10.0
libtpu: 0.0.40
codegen_flags: <defaults>
</compile_context>

<pallas_src>
import functools

import jax
import jax.numpy as jnp
from jax.experimental import pallas as pl
from jax.experimental.pallas import tpu as pltpu

IGNORE_TARGET = -1  # module __init__ default


def _round_up(x, m):
    return ((x + m - 1) // m) * m


def _cdiv(a, b):
    return -(-a // b)


def _sublane_align(dtype):
    # sublane multiple required for the block's second-to-last dim, per dtype packing
    return max(8, 32 // jnp.dtype(dtype).itemsize)


def _dice_partial_kernel(x_ref, t_ref, num_ref, den_ref, *, ignore_target, rows):
    tr, L = x_ref.shape
    i = pl.program_id(0)

    x = x_ref[...].astype(jnp.float32)                # native dtype -> f32 on VPU
    t = t_ref[...].astype(jnp.float32)
    s = jax.nn.sigmoid(x)

    # Row-validity mask for the (possibly OOB) last grid tile.  OOB rows have
    # unspecified contents (may be NaN), so mask via select, not multiply.
    row_idx = i * tr + jax.lax.broadcasted_iota(jnp.int32, (tr, L), 0)
    valid = (t != ignore_target) & (row_idx < rows)

    num = jnp.where(valid, jnp.minimum(s, t), 0.0)
    den = jnp.where(valid, jnp.maximum(s, t), 0.0)

    # Collapse row-groups of 8 on the VPU; keep an (8, L) lane-dense partial per step
    # (full unmasked vector stores, no XLU sublane reduce).
    num8 = num.reshape(tr // 8, 8, L).sum(axis=0)
    den8 = den.reshape(tr // 8, 8, L).sum(axis=0)
    num_ref[...] = num8.reshape(num_ref.shape)
    den_ref[...] = den8.reshape(den_ref.shape)


def dice_loss(logits, target, *, ignore_target=IGNORE_TARGET,
              lanes=512, max_tile_rows=2048):
    """logits/target: any shape (flattened like the PyTorch module). Returns scalar loss."""
    x = logits.reshape(-1)
    t = target.reshape(-1)
    n = x.shape[0]
    L = lanes

    if n % L != 0:
        # Fallback: the lane-dense reshape needs N % lanes == 0.  Pad only the
        # sub-lane tail (< lanes elements); target pad = ignore_target so the
        # in-kernel mask drops it.
        # TODO(synk): jnp.pad still materializes a full copy of both arrays; producers
        # should supply N as a multiple of `lanes` to stay on the zero-copy path.
        pad = L - n % L
        x = jnp.pad(x, (0, pad))
        t = jnp.pad(t, (0, pad), constant_values=ignore_target)
        n = n + pad

    rows = n // L
    align = max(_sublane_align(x.dtype), _sublane_align(t.dtype))
    # >= 2 grid steps whenever rows allows it (v7x 2-TC sharding), but cap the tile so
    # each step stays within a few MiB and VMEM double-buffering fits comfortably.
    tr = min(_round_up(max_tile_rows, align),
             max(align, _round_up(_cdiv(rows, 2), align)))
    g = _cdiv(rows, tr)

    x2 = x.reshape(rows, L)          # pure reshapes: no HBM traffic
    t2 = t.reshape(rows, L)

    kernel = functools.partial(_dice_partial_kernel,
                               ignore_target=float(ignore_target),
                               rows=rows)

    num_p, den_p = pl.pallas_call(
        kernel,
        out_shape=(jax.ShapeDtypeStruct((g, 8, L), jnp.float32),
                   jax.ShapeDtypeStruct((g, 8, L), jnp.float32)),
        grid_spec=pltpu.PrefetchScalarGridSpec(
            num_scalar_prefetch=0,
            grid=(g,),
            in_specs=[pl.BlockSpec((tr, L), lambda i: (i, 0)),
                      pl.BlockSpec((tr, L), lambda i: (i, 0))],
            out_specs=(pl.BlockSpec((1, 8, L), lambda i: (i, 0, 0)),
                       pl.BlockSpec((1, 8, L), lambda i: (i, 0, 0))),
        ),
        compiler_params=pltpu.CompilerParams(
            dimension_semantics=("parallel",),
            vmem_limit_bytes=40 * 1024 * 1024),
    )(x2, t2)

    num = jnp.sum(num_p)
    den = jnp.sum(den_p)
    return 1.0 - num / jnp.maximum(den, 1.0)


def _reference(logits, target, ignore_target=IGNORE_TARGET):
    s = jax.nn.sigmoid(logits.reshape(-1).astype(jnp.float32))
    t = target.reshape(-1).astype(jnp.float32)
    m = (t != ignore_target).astype(jnp.float32)
    num = jnp.sum(jnp.minimum(s, t) * m)
    den = jnp.maximum(jnp.sum(jnp.maximum(s, t) * m), 1.0)
    return 1.0 - num / den


if __name__ == "__main__":
    key = jax.random.PRNGKey(0)
    k1, k2, k3, k4, k5, k6 = jax.random.split(key, 6)

    # Case 1: typical point-cloud shape (B scenes x P points), rows % tr == 0.
    B, P = 2, 4096  # N = 8192 logits
    logits = jax.random.normal(k1, (B, P), dtype=jnp.float32) * 3.0
    target = jax.random.bernoulli(k2, 0.3, (B, P)).astype(jnp.float32)
    ignore = jax.random.bernoulli(k3, 0.1, (B, P))
    target = jnp.where(ignore, jnp.float32(IGNORE_TARGET), target)

    loss = jax.block_until_ready(dice_loss(logits, target))
    ref = _reference(logits, target)
    assert loss.shape == ()
    assert jnp.allclose(loss, ref, atol=1e-5, rtol=1e-5), (loss, ref)

    # Case 2: row count not a multiple of the tile (exercises the in-kernel OOB row mask).
    N2 = 24 * 512  # rows=24, tr=16 -> last grid tile has 8 out-of-bounds rows
    logits2 = jax.random.normal(k4, (N2,), dtype=jnp.float32) * 2.0
    target2 = jax.random.bernoulli(k5, 0.5, (N2,)).astype(jnp.float32)
    ignore2 = jax.random.bernoulli(k6, 0.05, (N2,))
    target2 = jnp.where(ignore2, jnp.float32(IGNORE_TARGET), target2)

    loss2 = jax.block_until_ready(dice_loss(logits2, target2))
    ref2 = _reference(logits2, target2)
    assert jnp.allclose(loss2, ref2, atol=1e-5, rtol=1e-5), (loss2, ref2)

    print("KERNEL_OK")
</pallas_src>

<mosaic_0001>
module attributes {stable_mosaic.version = 11 : i64} {
  func.func @_dice_partial_kernel(%arg0: i32, %arg1: memref<8x512xf32, #tpu.memory_space<vmem>>, %arg2: memref<8x512xf32, #tpu.memory_space<vmem>>, %arg3: memref<1x8x512xf32, #tpu.memory_space<vmem>>, %arg4: memref<1x8x512xf32, #tpu.memory_space<vmem>>) attributes {dimension_semantics = [#tpu.dimension_semantics<parallel>], iteration_bounds = array<i64: 2>, scalar_prefetch = 0 : i64, scratch_operands = 0 : i64, tpu.core_type = #tpu.core_type<tc>, window_params = [{transform_indices = @transform_0, window_bounds = array<i64: 8, 512>}, {transform_indices = @transform_1, window_bounds = array<i64: 8, 512>}, {transform_indices = @transform_2, window_bounds = array<i64: 1, 8, 512>}, {transform_indices = @transform_3, window_bounds = array<i64: 1, 8, 512>}]} {
    %c0 = arith.constant 0 : index
    %c0_0 = arith.constant 0 : index
    %0 = vector.load %arg1[%c0, %c0_0] : memref<8x512xf32, #tpu.memory_space<vmem>>, vector<8x512xf32>
    %c0_1 = arith.constant 0 : index
    %c0_2 = arith.constant 0 : index
    %1 = vector.load %arg2[%c0_1, %c0_2] : memref<8x512xf32, #tpu.memory_space<vmem>>, vector<8x512xf32>
    %2 = arith.negf %0 : vector<8x512xf32>
    %3 = math.exp %2 : vector<8x512xf32>
    %cst = arith.constant 1.000000e+00 : f32
    %4 = vector.broadcast %cst : f32 to vector<8x512xf32>
    %5 = arith.addf %4, %3 : vector<8x512xf32>
    %6 = arith.divf %4, %5 : vector<8x512xf32>
    %c8_i32 = arith.constant 8 : i32
    %7 = arith.muli %arg0, %c8_i32 : i32
    %8 = tpu.iota {dimensions = array<i32: 0>} : vector<8x512xi32>
    %9 = vector.broadcast %7 : i32 to vector<8x512xi32>
    %10 = arith.addi %9, %8 : vector<8x512xi32>
    %cst_3 = arith.constant -1.000000e+00 : f32
    %11 = vector.broadcast %cst_3 : f32 to vector<8x512xf32>
    %12 = arith.cmpf one, %1, %11 : vector<8x512xf32>
    %c16_i32 = arith.constant 16 : i32
    %13 = vector.broadcast %c16_i32 : i32 to vector<8x512xi32>
    %14 = arith.cmpi slt, %10, %13 : vector<8x512xi32>
    %15 = arith.andi %12, %14 : vector<8x512xi1>
    %16 = arith.minimumf %6, %1 : vector<8x512xf32>
    %cst_4 = arith.constant 0.000000e+00 : f32
    %17 = vector.broadcast %cst_4 : f32 to vector<8x512xf32>
    %18 = arith.select %15, %16, %17 : vector<8x512xi1>, vector<8x512xf32>
    %19 = arith.maximumf %6, %1 : vector<8x512xf32>
    %cst_5 = arith.constant 0.000000e+00 : f32
    %20 = vector.broadcast %cst_5 : f32 to vector<8x512xf32>
    %21 = arith.select %15, %19, %20 : vector<8x512xi1>, vector<8x512xf32>
    %22 = vector.shape_cast %18 : vector<8x512xf32> to vector<1x8x512xf32>
    %cst_6 = arith.constant dense<0.000000e+00> : vector<8x512xf32>
    %23 = vector.multi_reduction <add>, %22, %cst_6 [0] : vector<1x8x512xf32> to vector<8x512xf32>
    %24 = vector.shape_cast %21 : vector<8x512xf32> to vector<1x8x512xf32>
    %cst_7 = arith.constant dense<0.000000e+00> : vector<8x512xf32>
    %25 = vector.multi_reduction <add>, %24, %cst_7 [0] : vector<1x8x512xf32> to vector<8x512xf32>
    %26 = vector.shape_cast %23 : vector<8x512xf32> to vector<1x8x512xf32>
    %c0_8 = arith.constant 0 : index
    %c0_9 = arith.constant 0 : index
    %c0_10 = arith.constant 0 : index
    %27 = vector.load %arg3[%c0_8, %c0_9, %c0_10] : memref<1x8x512xf32, #tpu.memory_space<vmem>>, vector<1x8x512xf32>
    tpu.vector_store %arg3[%c0_8, %c0_9, %c0_10], %26 {strides = array<i32>} : memref<1x8x512xf32, #tpu.memory_space<vmem>>, vector<1x8x512xf32>,
    %28 = vector.shape_cast %25 : vector<8x512xf32> to vector<1x8x512xf32>
    %c0_11 = arith.constant 0 : index
    %c0_12 = arith.constant 0 : index
    %c0_13 = arith.constant 0 : index
    %29 = vector.load %arg4[%c0_11, %c0_12, %c0_13] : memref<1x8x512xf32, #tpu.memory_space<vmem>>, vector<1x8x512xf32>
    tpu.vector_store %arg4[%c0_11, %c0_12, %c0_13], %28 {strides = array<i32>} : memref<1x8x512xf32, #tpu.memory_space<vmem>>, vector<1x8x512xf32>,
    return
  }
  func.func @transform_0(%arg0: i32) -> (i32, i32) {
    %c0_i32 = arith.constant 0 : i32
    %c0_i32_0 = arith.constant 0 : i32
    return %arg0, %c0_i32 : i32, i32
  }
  func.func @transform_1(%arg0: i32) -> (i32, i32) {
    %c0_i32 = arith.constant 0 : i32
    %c0_i32_0 = arith.constant 0 : i32
    return %arg0, %c0_i32 : i32, i32
  }
  func.func @transform_2(%arg0: i32) -> (i32, i32, i32) {
    %c0_i32 = arith.constant 0 : i32
    %c0_i32_0 = arith.constant 0 : i32
    %c0_i32_1 = arith.constant 0 : i32
    return %arg0, %c0_i32, %c0_i32_0 : i32, i32, i32
  }
  func.func @transform_3(%arg0: i32) -> (i32, i32, i32) {
    %c0_i32 = arith.constant 0 : i32
    %c0_i32_0 = arith.constant 0 : i32
    %c0_i32_1 = arith.constant 0 : i32
    return %arg0, %c0_i32, %c0_i32_0 : i32, i32, i32
  }
}

</mosaic_0001>

<bundles_post_ra>
// kernel: tpu_custom_call.1
= control target key start
LH: loop header
LB: loop body
LE: loop exit
PB: predicated region body
PF: predicated region fallthrough
CT: control target
= control target key end

     0   :  { %9 = vsyncpa [#allocation3], 0  ;;  %s1172_s0 = inlined_call_operand.hbm [shape: f32[16,512], index: 0, kind: input, shape index: {}]   ;;  %s1173_s1 = inlined_call_operand.hbm [shape: f32[16,512], index: 1, kind: input, shape index: {}]   ;;  %s1174_s2 = inlined_call_operand.hbm [shape: f32[2,8,512], index: 2, kind: output, shape index: {0}]   ;;  %s1175_s3 = inlined_call_operand.hbm [shape: f32[2,8,512], index: 3, kind: output, shape index: {1}]  }
   0x1   :  { %11 = vsyncpa [#allocation3 + $0x1], 0 }
   0x2   :  { %12 = vsyncpa [#allocation6], 0 }
   0x3   :  { %14 = vsyncpa [#allocation6 + $0x1], 0 }
   0x4   :  { %15 = vsyncpa [#allocation4], 0 }
   0x5   :  { %17 = vsyncpa [#allocation4 + $0x1], 0 }
   0x6   :  { %18 = vsyncpa [#allocation9], 0 }
   0x7   :  { %20 = vsyncpa [#allocation9 + $0x1], 0  ;;  %s820_s12 = smov 0   ;;  %s822_s13 = smov 0  }
   0x8   :  { %s824_s14 = smov 0   ;;  %s826_s15 = smov 0  }
   0x9 LB: > { %s841_s16 = sadd.s32 4294967295, %s798_s15   ;;  %s533_s17 = sadd.s32 4294967294, %s798_s15   ;;  %s798_s15 = sphi %s826_s15, %s1210_s15   ;;  %s794_s14 = sphi %s824_s14, %s1209_s14   ;;  %s790_s13 = sphi %s822_s13, %s1208_s13   ;;  %s786_s12 = sphi %s820_s12, %s1207_s12  }
   0xa   : > { %s845_s18 = sadd.s32 1, %s798_s15   ;;  %s33_s19 = sadd.s32 1, %s794_s14 }
   0xb   : > { %s30_s20 = ssub.s32 %s798_s15, %s845_s18  ;;  %p40_p0 = scmp.ne.s32.totalorder %s794_s14, %s790_s13 }
   0xc   : > { %p31_p1 = scmp.eq.s32.totalorder %s30_s20, 0  ;;  %p41_p2 = scmp.eq.s32.totalorder %s798_s15, 0 }
   0xd   : > { %p46_p3 = scmp.ne.s32.totalorder %s790_s13, %s786_s12  ;;  %p47_p4 = scmp.eq.s32.totalorder %s841_s16, 0 }
   0xe   : > { %s857_s21 = scalar_select %p31_p1, %s794_s14, %s33_s19  }
   0xf   : > { %p859_p5 = por %p41_p2, %p40_p0  ;;  %p863_p6 = por %p47_p4, %p46_p3 }
  0x10   : > { %p96_p7 = scmp.eq.s32.totalorder %s841_s16, 1  ;;  %p102_p8 = scmp.eq.s32.totalorder %s533_s17, 1 }
  0x11   : > { %p586_p10 = scmp.lt.s32.totalorder %s798_s15, 2  ;;  %s879_s26 = sand.u32 1, %s794_s14  }
  0x12   : > { %p870_p11 = por %p96_p7, %p40_p0  ;;  %p874_p12 = por %p102_p8, %p46_p3 }
  0x13   : > { %s560_s27 = sshll.u32 %s798_s15, 5  ;;  %s536_s28 = sshll.u32 %s879_s26, 5 }
  0x14   : > { %s157_s4 = scalar_lea.hbm %s1172_s0, %s560_s27  ;;  %s152_s6 = scalar_lea.vmem [#allocation2], %s536_s28 }
  0x15   : > { %s159_s5 = sshll.u32 %s157_s4, 4  ;;  %s161_s7 = sshll.u32 %s152_s6, 4  ;;  %s160_s5 = int_to_ptr.hbm [resolvable:$true] %s159_s5  ;;  %s162_s7 = int_to_ptr.vmem [resolvable:$true] %s161_s7 }
  0x16   : > { %p888_p13 = pnand %p586_p10, %p859_p5  ;;  %p542_p0 = scmp.ge.s32.totalorder %s798_s15, 1 }
  0x17   : > { %p186_p1 = scmp.lt.s32.totalorder %s798_s15, 3  ;;  %s149_s9 = scalar_lea.sflag [#allocation3], %s879_s26 }
  0x18   : > { %s636_s10 = sshra.s32 %s160_s5, 4  ;;  %p640_p3 = pneg %p888_p13  ;;  %s637_s10 = int_to_ptr.hbm [resolvable:$true] %s636_s10 }
  0x19   : > { %s638_s11 = scalar_lea.hbm %s637_s10, 32  ;;  %s643_s20 = scalar_lea.hbm %s1172_s0, 64 }
  0x1a   : > { %p639_p2 = scmp.ne.s32.totalorder %s637_s10, %s638_s11  ;;  %p644_p5 = scmp.lt.s32.totalorder %s637_s10, %s1172_s0 }
  0x1b   : > { %p645_p8 = scmp.lt.s32.totalorder %s643_s20, %s638_s11 }
  0x1c   : > { %p641_p4 = pnand %p640_p3, %p639_p2 }
  0x1d   : > { %p646_p10 = por %p645_p8, %p644_p5 }
  0x1e   : > { %p642_p7 = pneg %p641_p4 }
  0x20   : > { %p647_p9 = pnand %p646_p10, %p642_p7 }
  0x22   : > { %650 = shalt.err (!%p647_p9)
}
  0x23   : > { %575 = dma.hbm_to_vmem [thread:$0]  (!%p888_p13), %s160_s5, 512, %s162_s7, %s149_s9  }
  0x24   : > { %p912_p2 = pnand %p542_p0, %p186_p1  ;;  %s177_s10 = scalar_lea.hbm %s1173_s1, %s560_s27 }
  0x25   : > { %s179_s11 = sshll.u32 %s177_s10, 4  ;;  %s172_s17 = scalar_lea.vmem [#allocation5], %s536_s28  ;;  %s180_s11 = int_to_ptr.hbm [resolvable:$true] %s179_s11 }
  0x26   : > { %s181_s19 = sshll.u32 %s172_s17, 4  ;;  %s169_s20 = scalar_lea.sflag [#allocation6], %s879_s26  ;;  %s182_s19 = int_to_ptr.vmem [resolvable:$true] %s181_s19 }
  0x27   : > { %s666_s22 = sshra.s32 %s180_s11, 4  ;;  %s673_s9 = scalar_lea.hbm %s1173_s1, 64  ;;  %s667_s22 = int_to_ptr.hbm [resolvable:$true] %s666_s22 }
  0x28   : > { %s668_s29 = scalar_lea.hbm %s667_s22, 32  ;;  %p674_p4 = scmp.lt.s32.totalorder %s667_s22, %s1173_s1 }
  0x29   : > { %p669_p9 = scmp.ne.s32.totalorder %s667_s22, %s668_s29  ;;  %p675_p7 = scmp.lt.s32.totalorder %s673_s9, %s668_s29 }
  0x2b   : > { %p671_p0 = pnand %p669_p9, %p640_p3  ;;  %p676_p5 = por %p675_p7, %p674_p4 }
  0x2d   : > { %p672_p1 = pneg %p671_p0 }
  0x2f   : > { %p677_p8 = pnand %p676_p5, %p672_p1 }
  0x31   : > { %680 = shalt.err (!%p677_p8)
}
  0x32   : > { %578 = dma.hbm_to_vmem [thread:$0]  (!%p888_p13), %s180_s11, 512, %s182_s19, %s169_s20  }
  0x33   : > { %190 = sbr.rel (%p912_p2) target bundleno = 112 (0x70), region = 28  ;;  %s934_s26 = sand.u32 (!%p912_p2), 1, %s790_s13  }
  0x34   : > { %s937_s28 = sshll.u32 (!%p912_p2), %s934_s26, 5  ;;  %s193_s6 = scalar_lea.sflag (!%p912_p2), [#allocation3], %s934_s26 }
  0x35   : > { %s196_s10 = scalar_lea.vmem (!%p912_p2), [#allocation2], %s937_s28 }
  0x38   : > { %769 = dma.done.wait (%p863_p6), %s193_s6, 512  }
  0x39   : > { %771 = vsyncadd (%p863_p6), %s193_s6, 4294966784  ;;  %s203_s8 = scalar_lea.sflag [#allocation6], %s934_s26  ;;  %s947_s30 = scalar_lea.vmem [#allocation5], %s937_s28 }
  0x3a   : > { %773 = dma.done.wait (%p863_p6), %s203_s8, 512  }
  0x3b   : > { %775 = vsyncadd (%p863_p6), %s203_s8, 4294966784  ;;  %v240_v0 = vld [vmem:[%s196_s10] sm:$0xff]  ;;  %v241_v1 = vld [vmem:[%s196_s10 + $0x8] sm:$0xff]  ;;  %v325_v8 = vlaneseq  ;;  %s551_s11 = sshll.u32 %s841_s16, 3  ;;  %s562_s23 = sshll.u32 %s841_s16, 5 }
  0x3c   : > { %v547_v2 = vmul.f32 -1.442695, %v240_v0  ;;  %v548_v3 = vmul.f32 -1.442695, %v241_v1  ;;  %v242_v4 = vld [vmem:[%s196_s10 + $0x10] sm:$0xff]  ;;  %v243_v6 = vld [vmem:[%s196_s10 + $0x18] sm:$0xff]  ;;  %v327_v16 = vstv %s551_s11  ;;  %s1047_s19 = scalar_lea.hbm %s1174_s2, %s562_s23  ;;  %s1068_s7 = scalar_lea.hbm %s1175_s3, %s562_s23 }
  0x3d   : > { %v549_v5 = vmul.f32 -1.442695, %v242_v4  ;;  %v550_v7 = vmul.f32 -1.442695, %v243_v6  ;;  %v326_v13 = vshrl.u32 %v325_v8, 7  ;;  %v959_v20 = vld [vmem:[%s947_s30] sm:$0xff] }
  0x3e   : > { %620 = vpow2.f32 %v547_v2  ;;  %v962_v23 = vld [vmem:[%s947_s30 + $0x8] sm:$0xff]  ;;  %v966_v27 = vld [vmem:[%s947_s30 + $0x10] sm:$0xff]  ;;  %vm329_vm0 = vcmp.ne.f32.partialorder %v959_v20, -1.0  ;;  %v971_v30 = vld [vmem:[%s947_s30 + $0x18] sm:$0xff]  ;;  %s1058_s20 = scalar_lea.vmem [#allocation7], %s937_s28  ;;  %s391_s9 = sshll.u32 %s1047_s19, 4  ;;  %s392_s9 = int_to_ptr.hbm [resolvable:$true] %s391_s9 }
  0x3f   : > { %622 = vpow2.f32 %v548_v3  ;;  %v956_v19 = vadd.s32 %v327_v16, %v326_v13  ;;  %vm330_vm4 = vcmp.ne.f32.partialorder %v962_v23, -1.0  ;;  %vm331_vm7 = vcmp.ne.f32.partialorder %v966_v27, -1.0  ;;  %s389_s22 = sshll.u32 %s1058_s20, 4  ;;  %s1101_s4 = scalar_lea.vmem [#allocation8], %s937_s28  ;;  %s1105_s22 = int_to_ptr.vmem [resolvable:$true] %s389_s22 }
  0x40   : > { %624 = vpow2.f32 %v549_v5  ;;  %vm332_vm10 = vcmp.ne.f32.partialorder %v971_v30, -1.0  ;;  %s404_s27 = sshll.u32 %s1101_s4, 4  ;;  %s406_s6 = sshll.u32 %s1068_s7, 4  ;;  %s1119_s27 = int_to_ptr.vmem [resolvable:$true] %s404_s27  ;;  %s1124_s6 = int_to_ptr.hbm [resolvable:$true] %s406_s6 }
  0x41   : > { %626 = vpow2.f32 %v550_v7  ;;  %vm333_vm1 = vcmp.lt.s32.totalorder %v956_v19, 16  ;;  %s371_s28 = scalar_lea.sflag [#allocation4], %s934_s26  ;;  %s710_s10 = sshra.s32 %s392_s9, 4  ;;  %s711_s10 = int_to_ptr.hbm [resolvable:$true] %s710_s10 }
  0x42   : > { %s712_s8 = scalar_lea.hbm %s711_s10, 32  ;;  %s716_s23 = scalar_lea.hbm %s1174_s2, 64 }
  0x43   : > { %p713_p6 = scmp.ne.s32.totalorder %s711_s10, %s712_s8  ;;  %p717_p10 = scmp.lt.s32.totalorder %s711_s10, %s1174_s2 }
  0x44   : > { %v621_v9 = vpop.eup %620  ;;  %p718_p2 = scmp.lt.s32.totalorder %s716_s23, %s712_s8 }
  0x45   : > { %v623_v10 = vpop.eup %622  ;;  %v260_v11 = vadd.f32 1.0, %v621_v9  ;;  %p714_p13 = pnand %p713_p6, %p870_p11 }
  0x46   : > { %v625_v12 = vpop.eup %624  ;;  %v261_v14 = vadd.f32 1.0, %v623_v10  ;;  %p719_p9 = por %p718_p2, %p717_p10 }
  0x47   : > { %v627_v15 = vpop.eup %626  ;;  %628 = vrcp.f32 %v260_v11  ;;  %v262_v17 = vadd.f32 1.0, %v625_v12  ;;  %v273_v21 = vand.u32 2147483647, %v260_v11  ;;  %v275_v22 = vand.u32 2147483648, %v260_v11  ;;  %p715_p3 = pneg %p714_p13 }
  0x48   : > { %630 = vrcp.f32 %v261_v14  ;;  %v954_v18 = vadd.f32 1.0, %v627_v15  ;;  %v288_v25 = vand.u32 2147483647, %v261_v14  ;;  %v290_v26 = vand.u32 2147483648, %v261_v14 }
  0x49   : > { %632 = vrcp.f32 %v262_v17  ;;  %vm269_vm2 = vweird.f32 %v260_v11  ;;  %vm284_vm3 = vweird.f32 %v261_v14  ;;  %vm974_vm6 = vcmp.eq.f32.partialorder %v273_v21, 8.507059e+37  ;;  %p720_p0 = pnand %p719_p9, %p715_p3 }
  0x4a   : > { %634 = vrcp.f32 %v954_v18  ;;  %v276_v34 = vor.u32 1.1754944e-38, %v275_v22  ;;  %vm979_vm9 = vcmp.eq.f32.partialorder %v288_v25, 8.507059e+37  ;;  %v291_v38 = vor.u32 1.1754944e-38, %v290_v26 }
  0x4b   : > { %v303_v42 = vand.u32 2147483647, %v262_v17  ;;  %v305_v43 = vand.u32 2147483648, %v262_v17  ;;  %vm299_vm12 = vweird.f32 %v262_v17  ;;  %v320_v47 = vand.u32 2147483648, %v954_v18 }
  0x4c   : > { %vm314_vm15 = vweird.f32 %v954_v18  ;;  %v318_v54 = vand.u32 2147483647, %v954_v18 }
  0x4d   : > { %v629_v24 = vpop.eup %628  ;;  %v306_v59 = vor.u32 1.1754944e-38, %v305_v43  ;;  %v321_v0 = vor.u32 1.1754944e-38, %v320_v47 }
  0x4e   : > { %v631_v28 = vpop.eup %630  ;;  %v265_v29 = vmul.f32 %v629_v24, %v260_v11  ;;  %vm270_vm5 = vweird.f32 %v629_v24 }
  0x4f   : > { %v280_v31 = vmul.f32 %v631_v28, %v261_v14  ;;  %v633_v35 = vpop.eup %632  ;;  %vm285_vm8 = vweird.f32 %v631_v28  ;;  %vm986_vm11 = vmor %vm269_vm2, %vm270_vm5 }
  0x50   : > { %v266_v32 = vsub.f32 1.0, %v265_v29  ;;  %v635_v39 = vpop.eup %634  ;;  %v295_v41 = vmul.f32 %v633_v35, %v262_v17  ;;  %vm994_vm13 = vmor %vm284_vm3, %vm285_vm8  ;;  %vm300_vm14 = vweird.f32 %v633_v35 }
  0x51   : > { %v281_v36 = vsub.f32 1.0, %v280_v31  ;;  %v310_v46 = vmul.f32 %v635_v39, %v954_v18  ;;  %vm1003_vm2 = vmand %vm329_vm0, %vm333_vm1  ;;  %vm315_vm5 = vweird.f32 %v635_v39  ;;  %vm1019_vm0 = vcmp.eq.f32.partialorder %v303_v42, 8.507059e+37 }
  0x52   : > { %v267_v40 = vmul.f32 %v629_v24, %v266_v32  ;;  %v296_v50 = vsub.f32 1.0, %v295_v41  ;;  %vm1015_vm3 = vmand %vm330_vm4, %vm333_vm1 }
  0x53   : > { %v282_v45 = vmul.f32 %v631_v28, %v281_v36  ;;  %v311_v53 = vsub.f32 1.0, %v310_v46  ;;  %vm1029_vm8 = vmor %vm299_vm12, %vm300_vm14 }
  0x54   : > { %v268_v48 = vadd.f32 %v629_v24, %v267_v40  ;;  %v297_v57 = vmul.f32 %v633_v35, %v296_v50  ;;  %vm1039_vm4 = vmor %vm314_vm15, %vm315_vm5 }
  0x55   : > { %v283_v52 = vadd.f32 %v631_v28, %v282_v45  ;;  %v312_v63 = vmul.f32 %v635_v39, %v311_v53 }
  0x56   : > { %v272_v55 = vsel %vm986_vm11, %v629_v24, %v268_v48  ;;  %v298_v3 = vadd.f32 %v633_v35, %v297_v57 }
  0x57   : > { %v277_v60 = vsel %vm974_vm6, %v276_v34, %v272_v55  ;;  %v287_v61 = vsel %vm994_vm13, %v631_v28, %v283_v52  ;;  %v313_v7 = vadd.f32 %v635_v39, %v312_v63  ;;  %vm1050_vm6 = vcmp.eq.f32.partialorder %v318_v54, 8.507059e+37 }
  0x58   : > { %v338_v1 = vmin.f32 %v277_v60, %v959_v20  ;;  %v292_v2 = vsel %vm979_vm9, %v291_v38, %v287_v61  ;;  %v346_v5 = vmax.f32 %v277_v60, %v959_v20  ;;  %v302_v11 = vsel %vm1029_vm8, %v633_v35, %v298_v3  ;;  %vm1079_vm9 = vmand %vm331_vm7, %vm333_vm1 }
  0x59   : > { %v339_v6 = vmin.f32 %v292_v2, %v962_v23  ;;  %v347_v9 = vmax.f32 %v292_v2, %v962_v23  ;;  %v307_v14 = vsel %vm1019_vm0, %v306_v59, %v302_v11  ;;  %v317_v16 = vsel %vm1039_vm4, %v635_v39, %v313_v7  ;;  %vm1096_vm7 = vmand %vm332_vm10, %vm333_vm1 }
  0x5a   : > { %v342_v10 = vsel %vm1003_vm2, %v338_v1, 0.0  ;;  %v350_v12 = vsel %vm1003_vm2, %v346_v5, 0.0  ;;  %v340_v18 = vmin.f32 %v307_v14, %v966_v27  ;;  %v322_v20 = vsel %vm1050_vm6, %v321_v0, %v317_v16 }
  0x5b   : > { %362 = vst [vmem:[%s1058_s20] sm:$0xff] %v342_v10  ;;  %v343_v13 = vsel %vm1015_vm3, %v339_v6, 0.0  ;;  %v351_v17 = vsel %vm1015_vm3, %v347_v9, 0.0  ;;  %v348_v22 = vmax.f32 %v307_v14, %v966_v27  ;;  %v341_v19 = vmin.f32 %v322_v20, %v971_v30 }
  0x5c   : > { %363 = vst [vmem:[%s1058_s20 + $0x8] sm:$0xff] %v343_v13  ;;  %v349_v23 = vmax.f32 %v322_v20, %v971_v30  ;;  %v344_v24 = vsel %vm1079_vm9, %v340_v18, 0.0 }
  0x5d   : > { %366 = vst [vmem:[%s1101_s4] sm:$0xff] %v350_v12  ;;  %v352_v25 = vsel %vm1079_vm9, %v348_v22, 0.0  ;;  %v345_v26 = vsel %vm1096_vm7, %v341_v19, 0.0 }
  0x5e   : > { %367 = vst [vmem:[%s1101_s4 + $0x8] sm:$0xff] %v351_v17  ;;  %v353_v27 = vsel %vm1096_vm7, %v349_v23, 0.0 }
  0x5f   : > { %364 = vst [vmem:[%s1058_s20 + $0x10] sm:$0xff] %v344_v24 }
  0x60   : > { %365 = vst [vmem:[%s1058_s20 + $0x18] sm:$0xff] %v345_v26 }
  0x61   : > { %368 = vst [vmem:[%s1101_s4 + $0x10] sm:$0xff] %v352_v25 }
  0x62   : > { %723 = shalt.err (!%p720_p0)
}
  0x63   : > { %568 = dma.vmem_to_hbm [thread:$0]  (%p870_p11), %s1105_s22, 512, %s392_s9, %s371_s28   ;;  %369 = vst [vmem:[%s1101_s4 + $0x18] sm:$0xff] %v353_v27 }
  0x64   : > { %s376_s19 = scalar_lea.sflag [#allocation9], %s934_s26  ;;  %s738_s20 = sshra.s32 %s1124_s6, 4  ;;  %s739_s20 = int_to_ptr.hbm [resolvable:$true] %s738_s20 }
  0x65   : > { %s740_s29 = scalar_lea.hbm %s739_s20, 32  ;;  %s744_s10 = scalar_lea.hbm %s1175_s3, 64 }
  0x66   : > { %p741_p1 = scmp.ne.s32.totalorder %s739_s20, %s740_s29  ;;  %p745_p5 = scmp.lt.s32.totalorder %s739_s20, %s1175_s3 }
  0x67   : > { %p746_p8 = scmp.lt.s32.totalorder %s744_s10, %s740_s29 }
  0x68   : > { %p742_p4 = pnand %p741_p1, %p870_p11 }
  0x69   : > { %p747_p6 = por %p746_p8, %p745_p5 }
  0x6a   : > { %p743_p7 = pneg %p742_p4 }
  0x6c   : > { %p748_p13 = pnand %p747_p6, %p743_p7 }
  0x6e   : > { %751 = shalt.err (!%p748_p13)
}
  0x6f   : > { %569 = dma.vmem_to_hbm [thread:$0]  (%p870_p11), %s1119_s27, 512, %s1124_s6, %s376_s19  }
  0x70 PF: > { %s418_s26 = sand.u32 1, %s786_s12   ;;  %p1206_p3 = scmp.ge.s32.totalorder %s798_s15, 2 }
  0x71   : > { %s419_s22 = scalar_lea.sflag [#allocation4], %s418_s26 }
  0x72   : > { %p580_p10 = pnand %p1206_p3, %p874_p12 }
  0x74   : > { %p581_p2 = pneg %p580_p10 }
  0x76   : > { %777 = dma.done.wait (%p581_p2), %s419_s22, 512  }
  0x77   : > { %779 = vsyncadd (%p581_p2), %s419_s22, 4294966784  ;;  %s429_s9 = scalar_lea.sflag [#allocation9], %s418_s26 }
  0x78   : > { %781 = dma.done.wait (%p581_p2), %s429_s9, 512  }
  0x79   : > { %783 = vsyncadd (%p581_p2), %s429_s9, 4294966784  ;;  %p23_p11 = scmp.ge.s32.totalorder %s845_s18, 4   ;;  %s1207_s12 = smov %s790_s13 }
  0x7a   : > { %s1208_s13 = smov %s794_s14  ;;  %s1209_s14 = smov %s857_s21 }
  0x7b   : > { %s1210_s15 = smov %s845_s18  ;;  %25 = sbr.rel (!%p23_p11) target bundleno = 9 (0x9), region = 103 }
  0x80   :  { %435 = vsyncpa [#allocation3], 1 }
  0x81   :  { %437 = vsyncpa [#allocation3 + $0x1], 1 }
  0x82   :  { %438 = vsyncpa [#allocation6], 1 }
  0x83   :  { %440 = vsyncpa [#allocation6 + $0x1], 1 }
  0x84   :  { %441 = vsyncpa [#allocation4], 1 }
  0x85   :  { %443 = vsyncpa [#allocation4 + $0x1], 1 }
  0x86   :  { %444 = vsyncpa [#allocation9], 1 }
  0x87   :  { %446 = vsyncpa [#allocation9 + $0x1], 1 }

</bundles_post_ra>
